<compile_context>
chip_gen: v7x
topology: tpu7x:2x2x1
jax: 0.10.0
libtpu: 0.0.40
codegen_flags: <defaults>
</compile_context>

<pallas_src>
import math

import jax
import jax.numpy as jnp
from jax.experimental import pallas as pl
from jax.experimental.pallas import tpu as pltpu


_GATHER_ROWS = 8  # rows gathered per gate-kernel grid step (one sublane tile)


def _round_up(v, m):
    return ((v + m - 1) // m) * m


def _pick_tile(n_pad, max_tile):
    """Largest power-of-two tile <= max_tile dividing n_pad (n_pad % 128 == 0)."""
    t = 128
    while t * 2 <= min(max_tile, n_pad) and n_pad % (t * 2) == 0:
        t *= 2
    return t


# ---------------------------------------------------------------------------
# Pallas kernels
# ---------------------------------------------------------------------------
def _score_kernel(ht_ref, adjt_ref, b_ref, score_ref, acc_ref):
    """score^T tile: acc(1, tn) += h^T[0, kblk] @ Â^T[kblk, jblk]  (bf16 -> f32)."""
    kb = pl.program_id(1)

    @pl.when(kb == 0)
    def _init():
        acc_ref[...] = jnp.zeros_like(acc_ref)

    # bf16 x bf16 operands go straight to the MXU; accumulation stays f32.
    acc_ref[...] += jnp.dot(ht_ref[...], adjt_ref[...],
                            preferred_element_type=jnp.float32)

    @pl.when(kb == pl.num_programs(1) - 1)
    def _finalize():
        score_ref[...] = acc_ref[...] + b_ref[0]


def _gate_kernel(perm_ref, gscore_ref, x_hbm, out_ref, xbuf, sems):
    """out[rows, :] = x[perm[rows], :] * tanh(score[perm[rows]]) via DMA gather."""
    i = pl.program_id(0)
    base = i * _GATHER_ROWS

    copies = []
    for r in range(_GATHER_ROWS):
        row = perm_ref[base + r]                      # scalar read from SMEM
        cp = pltpu.make_async_copy(
            x_hbm.at[pl.ds(row, 1)], xbuf.at[pl.ds(r, 1)], sems.at[r])
        cp.start()
        copies.append(cp)
    for cp in copies:
        cp.wait()
    # TODO(synk): double-buffer the gathered rows across grid steps to overlap
    # the gather DMAs with the gate compute for very large K.

    out_ref[...] = xbuf[...] * jnp.tanh(gscore_ref[...])


# ---------------------------------------------------------------------------
# Pallas wrappers
# ---------------------------------------------------------------------------
def gcn_score(h_row_bf16, adj_t_bf16, b_vec, *, max_tn=2048, max_tk=1024):
    """score^T (1, N_pad) = h^T @ Â^T + b, tiled over (columns, reduction)."""
    _, n_pad = h_row_bf16.shape
    tn = _pick_tile(n_pad, max_tn)
    tk = _pick_tile(n_pad, max_tk)
    grid = (n_pad // tn, n_pad // tk)
    # Per-step VMEM ~ 2 * tk * tn * 2 B (double-buffered bf16 Â tile)
    # <= 8 MiB at (1024, 2048): fits every generation's scoped default.
    return pl.pallas_call(
        _score_kernel,
        out_shape=jax.ShapeDtypeStruct((1, n_pad), jnp.float32),
        grid=grid,
        in_specs=[
            pl.BlockSpec((1, tk), lambda j, k: (0, k)),            # h^T (bf16)
            pl.BlockSpec((tk, tn), lambda j, k: (k, j)),           # Â^T tile (bf16)
            pl.BlockSpec(memory_space=pltpu.MemorySpace.SMEM),     # bias scalar
        ],
        out_specs=pl.BlockSpec((1, tn), lambda j, k: (0, j)),      # lane-dense scores
        scratch_shapes=[pltpu.VMEM((1, tn), jnp.float32)],         # f32 accumulator
        compiler_params=pltpu.CompilerParams(
            dimension_semantics=("parallel", "arbitrary")),
    )(h_row_bf16, adj_t_bf16, b_vec)


def gated_select(perm_pad, score_perm_pad, x_feat_pad):
    """x[perm] * tanh(score[perm]); row gather done by in-kernel DMAs from HBM."""
    k_pad = perm_pad.shape[0]
    _, f_pad = x_feat_pad.shape
    grid_spec = pltpu.PrefetchScalarGridSpec(
        num_scalar_prefetch=1,                      # perm -> SMEM
        grid=(k_pad // _GATHER_ROWS,),
        in_specs=[
            pl.BlockSpec((_GATHER_ROWS, 1), lambda i, perm: (i, 0)),  # score[perm]
            pl.BlockSpec(memory_space=pl.ANY),                        # x stays in HBM
        ],
        out_specs=pl.BlockSpec((_GATHER_ROWS, f_pad), lambda i, perm: (i, 0)),
        scratch_shapes=[
            pltpu.VMEM((_GATHER_ROWS, f_pad), jnp.float32),
            pltpu.SemaphoreType.DMA((_GATHER_ROWS,)),
        ],
    )
    return pl.pallas_call(
        _gate_kernel,
        out_shape=jax.ShapeDtypeStruct((k_pad, f_pad), jnp.float32),
        grid_spec=grid_spec,
        compiler_params=pltpu.CompilerParams(dimension_semantics=("arbitrary",)),
    )(perm_pad, score_perm_pad, x_feat_pad)


# ---------------------------------------------------------------------------
# JAX glue: GCN normalization, top-k, filter_adj
# ---------------------------------------------------------------------------
def build_norm_adj(edge_index, num_nodes):
    """Dense Â = D^-1/2 (A + I) D^-1/2 with Â[dst, src] (messages flow src->dst)."""
    src, dst = edge_index[0], edge_index[1]
    a = jnp.zeros((num_nodes, num_nodes), jnp.float32).at[dst, src].add(1.0)
    a = a + jnp.eye(num_nodes, dtype=jnp.float32)          # add self loops
    deg = a.sum(axis=1)
    dinv = jnp.where(deg > 0, jax.lax.rsqrt(deg), 0.0)
    return a * dinv[:, None] * dinv[None, :]
    # TODO(synk): for large sparse graphs, replace the dense Â matvec with a
    # CSR/segmented aggregation (scalar-prefetched row offsets + DMA gathers)
    # instead of materializing O(N^2) bytes.


def topk_single_graph(score, ratio):
    """PyG `topk` for batch == all-zeros (single graph): top ceil(ratio*N) ids."""
    n = score.shape[0]
    k = int(math.ceil(ratio * n))
    _, perm = jax.lax.top_k(score, k)                       # descending by score
    return perm


def filter_adj(edge_index, edge_x, perm, num_nodes):
    """Keep edges whose both endpoints survive; remap node ids to new slots."""
    k = perm.shape[0]
    keep_mask = jnp.zeros((num_nodes,), dtype=bool).at[perm].set(True)
    new_idx = jnp.full((num_nodes,), -1, dtype=jnp.int32).at[perm].set(
        jnp.arange(k, dtype=jnp.int32))
    row, col = edge_index[0], edge_index[1]
    edge_mask = keep_mask[row] & keep_mask[col]
    # TODO(synk): dynamic-size boolean indexing (like PyG's filter_adj) is
    # eager-only; a jit-friendly variant would return a fixed-size padded
    # edge list plus a count.
    row_f = new_idx[row][edge_mask]
    col_f = new_idx[col][edge_mask]
    new_edge_index = jnp.stack([row_f, col_f], axis=0)
    new_edge_x = None if edge_x is None else edge_x[edge_mask]
    return new_edge_index, new_edge_x


# ---------------------------------------------------------------------------
# SAGPool forward
# ---------------------------------------------------------------------------
def sag_pool_forward(x, edge_index, w, b, edge_x=None, batch=None, ratio=0.8):
    n, f = x.shape
    if batch is None:
        batch = jnp.zeros((n,), dtype=jnp.int32)
    # TODO(synk): multi-graph batches (batch != all zeros) would need per-graph
    # top-k; this matches the module's default single-graph path.

    n_pad = _round_up(n, 128)
    f_pad = _round_up(f, 128)

    # ---- wrapper-side layout plumbing (cheap) -----------------------------
    adj_norm = build_norm_adj(edge_index, n)                        # (N, N) f32
    # Padded Â^T built directly in bf16 (no N_pad^2 f32 intermediate).
    adj_t_bf16 = (jnp.zeros((n_pad, n_pad), jnp.bfloat16)
                  .at[:n, :n].set(adj_norm.T.astype(jnp.bfloat16)))
    # Hoisted GEMV: h = X @ W (tiny), transposed, zero-padded, bf16.
    h = (x @ w)[:, 0]                                               # (N,) f32
    h_row = (jnp.zeros((1, n_pad), jnp.bfloat16)
             .at[0, :n].set(h.astype(jnp.bfloat16)))
    b_vec = jnp.asarray(b, jnp.float32).reshape((1,))               # SMEM scalar

    # ---- GCNConv(inp_size, 1) score  (Pallas, lane-dense output) ----------
    score_row = gcn_score(h_row, adj_t_bf16, b_vec)                 # (1, N_pad) f32
    score = score_row[0, :n]                                        # .squeeze()

    # ---- top-k node selection (index glue) --------------------------------
    perm = topk_single_graph(score, ratio)                          # (K,)
    k = perm.shape[0]
    k_pad = _round_up(k, _GATHER_ROWS)

    # ---- fused DMA row-gather + tanh gate  (Pallas) ------------------------
    perm_pad = jnp.zeros((k_pad,), jnp.int32).at[:k].set(perm.astype(jnp.int32))
    score_perm_pad = (jnp.zeros((k_pad, 1), jnp.float32)
                      .at[:k, 0].set(score[perm]))                  # O(K) glue gather
    x_feat_pad = jnp.zeros((n, f_pad), jnp.float32).at[:, :f].set(x)
    x_out = gated_select(perm_pad, score_perm_pad, x_feat_pad)[:k, :f]

    batch_out = batch[perm]
    edge_index_out, edge_x_out = filter_adj(edge_index, edge_x, perm, num_nodes=n)
    return x_out, edge_index_out, edge_x_out, batch_out, perm


# ---------------------------------------------------------------------------
# main
# ---------------------------------------------------------------------------
if __name__ == "__main__":
    key = jax.random.PRNGKey(0)
    k_x, k_w = jax.random.split(key)

    num_nodes = 16
    inp_size = 32
    ratio = 0.8

    # deterministic node features
    x = jax.random.normal(k_x, (num_nodes, inp_size), dtype=jnp.float32)

    # deterministic graph: bidirectional ring + a few chords
    src = jnp.arange(num_nodes, dtype=jnp.int32)
    dst = (src + 1) % num_nodes
    chord_src = jnp.array([0, 3, 5, 8], dtype=jnp.int32)
    chord_dst = jnp.array([7, 11, 13, 2], dtype=jnp.int32)
    rows = jnp.concatenate([src, dst, chord_src, chord_dst])
    cols = jnp.concatenate([dst, src, chord_dst, chord_src])
    edge_index = jnp.stack([rows, cols], axis=0)            # (2, 40) int32

    # deterministic GCNConv(inp_size, 1) parameters (glorot-ish W, zero bias)
    limit = math.sqrt(6.0 / (inp_size + 1))
    w = jax.random.uniform(k_w, (inp_size, 1), jnp.float32, -limit, limit)
    b = jnp.zeros((1,), dtype=jnp.float32)

    x_out, ei_out, ex_out, batch_out, perm = sag_pool_forward(
        x, edge_index, w, b, edge_x=None, batch=None, ratio=ratio)

    jax.block_until_ready(x_out)
    jax.block_until_ready(ei_out)
    jax.block_until_ready(batch_out)
    jax.block_until_ready(perm)

    k_expected = int(math.ceil(ratio * num_nodes))
    assert x_out.shape == (k_expected, inp_size)
    assert ei_out.shape[0] == 2
    assert batch_out.shape == (k_expected,)

    # Tight check vs a reference using the same bf16-rounded operands the
    # kernel consumed (Â and h are deliberately streamed in bf16).
    adj_f32 = build_norm_adj(edge_index, num_nodes)
    adj_bf = adj_f32.astype(jnp.bfloat16).astype(jnp.float32)
    h_bf = (x @ w).astype(jnp.bfloat16).astype(jnp.float32)
    score_bf = (adj_bf @ h_bf)[:, 0] + b[0]
    ref_x_out = x[perm] * jnp.tanh(score_bf[perm])[:, None]
    assert bool(jnp.allclose(x_out, ref_x_out, rtol=1e-3, atol=1e-3)), (
        "gated output mismatch vs bf16-consistent reference")

    # Loose check vs full-f32 GCN semantics, documenting the bf16 rounding of
    # the normalized adjacency / hidden vector (deliberate bandwidth tradeoff).
    score_f32 = (adj_f32 @ (x @ w))[:, 0] + b[0]
    ref_x_out_f32 = x[perm] * jnp.tanh(score_f32[perm])[:, None]
    assert bool(jnp.allclose(x_out, ref_x_out_f32, rtol=5e-2, atol=1e-1)), (
        "gated output drifted too far from f32 reference")

    print("KERNEL_OK")
</pallas_src>

<mosaic_0001>
module attributes {stable_mosaic.version = 11 : i64} {
  func.func @_score_kernel(%arg0: i32, %arg1: i32, %arg2: memref<1x128xbf16, #tpu.memory_space<vmem>>, %arg3: memref<128x128xbf16, #tpu.memory_space<vmem>>, %arg4: memref<1xf32, #tpu.memory_space<smem>>, %arg5: memref<1x128xf32, #tpu.memory_space<vmem>>, %arg6: memref<1x128xf32, #tpu.memory_space<vmem>>) attributes {dimension_semantics = [#tpu.dimension_semantics<parallel>, #tpu.dimension_semantics<arbitrary>], iteration_bounds = array<i64: 1, 1>, scalar_prefetch = 0 : i64, scratch_operands = 1 : i64, tpu.core_type = #tpu.core_type<tc>, window_params = [{transform_indices = @transform_0, window_bounds = array<i64: 1, 128>}, {transform_indices = @transform_1, window_bounds = array<i64: 128, 128>}, {transform_indices = @transform_2, window_bounds = array<i64: 1>}, {transform_indices = @transform_3, window_bounds = array<i64: 1, 128>}]} {
    %c0_i32 = arith.constant 0 : i32
    %0 = arith.cmpi eq, %arg1, %c0_i32 : i32
    %1 = arith.extui %0 : i1 to i32
    %c0_i32_0 = arith.constant 0 : i32
    %2 = arith.cmpi ne, %1, %c0_i32_0 : i32
    scf.if %2 {
      %cst_10 = arith.constant 0.000000e+00 : f32
      %12 = vector.broadcast %cst_10 : f32 to vector<1x128xf32>
      %c0_11 = arith.constant 0 : index
      %c0_12 = arith.constant 0 : index
      %13 = vector.load %arg6[%c0_11, %c0_12] : memref<1x128xf32, #tpu.memory_space<vmem>>, vector<1x128xf32>
      tpu.vector_store %arg6[%c0_11, %c0_12], %12 {strides = array<i32>} : memref<1x128xf32, #tpu.memory_space<vmem>>, vector<1x128xf32>,
    } else {
    }
    %c0 = arith.constant 0 : index
    %c0_1 = arith.constant 0 : index
    %3 = vector.load %arg6[%c0, %c0_1] : memref<1x128xf32, #tpu.memory_space<vmem>>, vector<1x128xf32>
    %c0_2 = arith.constant 0 : index
    %c0_3 = arith.constant 0 : index
    %4 = vector.load %arg2[%c0_2, %c0_3] : memref<1x128xbf16, #tpu.memory_space<vmem>>, vector<1x128xbf16>
    %c0_4 = arith.constant 0 : index
    %c0_5 = arith.constant 0 : index
    %5 = vector.load %arg3[%c0_4, %c0_5] : memref<128x128xbf16, #tpu.memory_space<vmem>>, vector<128x128xbf16>
    %cst = arith.constant dense<0.000000e+00> : vector<1x128xf32>
    %6 = tpu.matmul %4, %5, %cst {dimension_numbers = #tpu.dot_dimension_numbers<[1], [0], [0], [1], [0, 0, 1, 1], [], []>} : vector<1x128xbf16>, vector<128x128xbf16>, vector<1x128xf32> -> vector<1x128xf32>
    %7 = arith.addf %3, %6 : vector<1x128xf32>
    %c0_6 = arith.constant 0 : index
    %c0_7 = arith.constant 0 : index
    %8 = vector.load %arg6[%c0_6, %c0_7] : memref<1x128xf32, #tpu.memory_space<vmem>>, vector<1x128xf32>
    tpu.vector_store %arg6[%c0_6, %c0_7], %7 {strides = array<i32>} : memref<1x128xf32, #tpu.memory_space<vmem>>, vector<1x128xf32>,
    %c0_i32_8 = arith.constant 0 : i32
    %9 = arith.cmpi eq, %arg1, %c0_i32_8 : i32
    %10 = arith.extui %9 : i1 to i32
    %c0_i32_9 = arith.constant 0 : i32
    %11 = arith.cmpi ne, %10, %c0_i32_9 : i32
    scf.if %11 {
      %c0_10 = arith.constant 0 : index
      %c0_11 = arith.constant 0 : index
      %12 = vector.load %arg6[%c0_10, %c0_11] : memref<1x128xf32, #tpu.memory_space<vmem>>, vector<1x128xf32>
      %c0_12 = arith.constant 0 : index
      %13 = memref.load %arg4[%c0_12] : memref<1xf32, #tpu.memory_space<smem>>
      %14 = vector.broadcast %13 : f32 to vector<1x128xf32>
      %15 = arith.addf %12, %14 : vector<1x128xf32>
      %c0_13 = arith.constant 0 : index
      %c0_14 = arith.constant 0 : index
      %16 = vector.load %arg5[%c0_13, %c0_14] : memref<1x128xf32, #tpu.memory_space<vmem>>, vector<1x128xf32>
      tpu.vector_store %arg5[%c0_13, %c0_14], %15 {strides = array<i32>} : memref<1x128xf32, #tpu.memory_space<vmem>>, vector<1x128xf32>,
    } else {
    }
    return
  }
  func.func @transform_0(%arg0: i32, %arg1: i32) -> (i32, i32) {
    %c0_i32 = arith.constant 0 : i32
    %c0_i32_0 = arith.constant 0 : i32
    return %c0_i32, %arg1 : i32, i32
  }
  func.func @transform_1(%arg0: i32, %arg1: i32) -> (i32, i32) {
    %c0_i32 = arith.constant 0 : i32
    return %arg1, %arg0 : i32, i32
  }
  func.func @transform_2(%arg0: i32, %arg1: i32) -> i32 {
    %c0_i32 = arith.constant 0 : i32
    %c0_i32_0 = arith.constant 0 : i32
    return %c0_i32 : i32
  }
  func.func @transform_3(%arg0: i32, %arg1: i32) -> (i32, i32) {
    %c0_i32 = arith.constant 0 : i32
    %c0_i32_0 = arith.constant 0 : i32
    return %c0_i32, %arg0 : i32, i32
  }
}

</mosaic_0001>

<bundles_post_ra>
// kernel: tpu_custom_call.1
= control target key start
LH: loop header
LB: loop body
LE: loop exit
PB: predicated region body
PF: predicated region fallthrough
CT: control target
= control target key end

     0   :  { %9 = vsyncpa [#allocation5], 0  ;;  %s322_s0 = inlined_call_operand.vmem [shape: bf16[1,128], index: 0, kind: input, shape index: {}]   ;;  %s323_s1 = inlined_call_operand.hbm [shape: bf16[128,128], index: 1, kind: input, shape index: {}]   ;;  %s324_s2 = inlined_call_operand.<no memory space> [shape: f32[1], index: 2, kind: input, shape index: {}]   ;;  %s325_s3 = inlined_call_operand.hbm [shape: f32[1,128], index: 3, kind: output, shape index: {}]  }
   0x1   :  { %10 = vsyncpa [#allocation6], 0  ;;  %s266_s12 = smov [#allocation4]   ;;  %s218_s16 = scalar_lea.hbm %s323_s1, 1024 }
   0x2   :  { %s18_s13 = sshll.u32 %s266_s12, 4  ;;  %p219_p0 = scmp.ne.s32.totalorder %s323_s1, %s218_s16  ;;  %s19_s13 = int_to_ptr.vmem [resolvable:$true] %s18_s13 }
   0x3   :  { %p222_p1 = scmp.lt.u32.totalorder %s218_s16, %s323_s1 }
   0x5   :  { %p224_p2 = pnand %p222_p1, %p219_p0 }
   0x7   :  { %227 = shalt.err (!%p224_p2)
}
   0x8   :  { %s228_s21 = scalar_lea.vmem %s19_s13, 1024  ;;  %p233_p4 = scmp.lt.s32.totalorder %s19_s13, %s19_s13 }
   0x9   :  { %p229_p3 = scmp.ne.s32.totalorder %s19_s13, %s228_s21  ;;  %p234_p5 = scmp.lt.s32.totalorder %s228_s21, %s228_s21 }
   0xb   :  { %p235_p6 = por %p234_p5, %p233_p4 }
   0xd   :  { %p236_p7 = pnand %p235_p6, %p229_p3 }
   0xf   :  { %239 = shalt.err (!%p236_p7)
}
  0x10   :  { %s267_s22 = smov 64   ;;  %s268_s23 = smov 4  }
  0x11   :  { %24 = dma.hbm_to_vmem [thread:$0]  %s323_s1, 1024, %s19_s13, [#allocation5], %s267_s22, %s267_s22, %s268_s23  }
  0x12   :  { %262 = dma.done.wait [#allocation5], 1024  }
  0x13   :  { %263 = vsyncadd [#allocation5], 4294966272  ;;  %v269_v0 = vmov 0.0   ;;  %vm270_vm0 = vmmov 0   ;;  %v210_v1 = vld [vmem:[#allocation4] sm:$0xff]   ;;  %v211_v2 = vld [vmem:[#allocation4 + $0x8] sm:$0xff]   ;;  %v149_v16 = vstv %s324_s2 }
  0x14   :  { %184 = vmatprep.subr.bf16.mxu0 %v269_v0  ;;  %35 = vst [vmem:[#allocation2] sm:$0x1] %v269_v0  ;;  %200 = vmatprep.mubr.msk.bf16.mxu0 %vm270_vm0, %v269_v0  ;;  %v212_v3 = vld [vmem:[#allocation4 + $0x10] sm:$0xff]   ;;  %v213_v4 = vld [vmem:[#allocation4 + $0x18] sm:$0xff]   ;;  %v214_v5 = vld [vmem:[#allocation4 + $0x20] sm:$0xff]   ;;  %s271_s29 = smov [#allocation7]  }
  0x15   :  { %185 = vmatpush3.bf16.msra.mxu0 %v210_v1  ;;  %v215_v6 = vld [vmem:[#allocation4 + $0x28] sm:$0xff]   ;;  %v216_v7 = vld [vmem:[#allocation4 + $0x30] sm:$0xff]   ;;  %v217_v8 = vld [vmem:[#allocation4 + $0x38] sm:$0xff]   ;;  %s158_s30 = sshll.u32 %s271_s29, 4  ;;  %s159_s30 = int_to_ptr.vmem [resolvable:$true] %s158_s30 }
  0x16   :  { %186 = vmatprep.subr.bf16.mxu0 %v269_v0  ;;  %v37_v9 = vld [vmem:[%s322_s0] sm:$0x1]  ;;  %s240_s4 = scalar_lea.vmem %s159_s30, 16  ;;  %s244_s0 = scalar_lea.vmem %s159_s30, 32 }
  0x17   :  { %p241_p8 = scmp.ne.s32.totalorder %s159_s30, %s240_s4  ;;  %p245_p9 = scmp.lt.s32.totalorder %s159_s30, %s159_s30 }
  0x18   :  { %p246_p10 = scmp.lt.s32.totalorder %s244_s0, %s240_s4 }
  0x19   :  { %187 = vmatpush3.bf16.msra.mxu0 %v211_v2 }
  0x1a   :  { %188 = vmatprep.subr.bf16.mxu0 %v269_v0  ;;  %p247_p11 = por %p246_p10, %p245_p9 }
  0x1b   :  { %v36_v10 = vld [vmem:[#allocation2] sm:$0x1] }
  0x1c   :  { %p248_p12 = pnand %p247_p11, %p241_p8 }
  0x1d   :  { %189 = vmatpush3.bf16.msra.mxu0 %v212_v3 }
  0x1e   :  { %190 = vmatprep.subr.bf16.mxu0 %v269_v0 }
  0x21   :  { %191 = vmatpush3.bf16.msra.mxu0 %v213_v4 }
  0x22   :  { %192 = vmatprep.subr.bf16.mxu0 %v269_v0 }
  0x25   :  { %193 = vmatpush3.bf16.msra.mxu0 %v214_v5 }
  0x26   :  { %194 = vmatprep.subr.bf16.mxu0 %v269_v0 }
  0x29   :  { %195 = vmatpush3.bf16.msra.mxu0 %v215_v6 }
  0x2a   :  { %196 = vmatprep.subr.bf16.mxu0 %v269_v0 }
  0x2d   :  { %197 = vmatpush3.bf16.msra.mxu0 %v216_v7 }
  0x2e   :  { %198 = vmatprep.subr.bf16.mxu0 %v269_v0 }
  0x31   :  { %199 = vmatpush3.bf16.msra.mxu0 %v217_v8 }
  0x34   :  { %201 = vmatmul.mubr.bf16.vlgmr.msra.gmra.mrb[0].mxu0 %v37_v9 }
 0x107   :  { %v136_v11 = vpop.f32.mrb[0].mxu0 }
 0x108   :  { %v142_v12 = vadd.f32 %v136_v11, %v36_v10  ;;  %v202_v13 = vpop.f32.mrb[1].mxu0 }
 0x109   :  { %v139_v14 = vpop.f32.mrb[2].mxu0 }
 0x10a   :  { %143 = vst [vmem:[#allocation2] sm:$0x1] %v142_v12  ;;  %v203_v15 = vpop.f32.mrb[3].mxu0 }
 0x111   :  { %v147_v17 = vld [vmem:[#allocation2] sm:$0x1] }
 0x112   :  { %v150_v18 = vadd.f32 %v149_v16, %v147_v17 }
 0x114   :  { %151 = vst [vmem:[#allocation7] sm:$0x1] %v150_v18 }
 0x115   :  { %251 = shalt.err (!%p248_p12)
}
 0x116   :  { %s252_s7 = scalar_lea.hbm %s325_s3, 16 }
 0x117   :  { %p253_p13 = scmp.ne.s32.totalorder %s325_s3, %s252_s7  ;;  %p256_p0 = scmp.lt.u32.totalorder %s252_s7, %s325_s3 }
 0x119   :  { %p258_p1 = pnand %p256_p0, %p253_p13 }
 0x11b   :  { %261 = shalt.err (!%p258_p1)
}
 0x11c   :  { %161 = dma.vmem_to_hbm [thread:$0]  %s159_s30, 16, %s325_s3, [#allocation6]  }
 0x11d   :  { %264 = dma.done.wait [#allocation6], 16  }
 0x11e   :  { %265 = vsyncadd [#allocation6], 4294967280 }
 0x11f   :  { %165 = vsyncpa [#allocation5], 1 }
 0x120   :  { %166 = vsyncpa [#allocation6], 1 }

</bundles_post_ra>
